<compile_context>
chip_gen: v7x
topology: tpu7x:2x2x1
jax: 0.10.0
libtpu: 0.0.40
codegen_flags: <defaults>
</compile_context>

<pallas_src>
import functools

import jax
import jax.numpy as jnp
from jax.experimental import pallas as pl
from jax.experimental.pallas import tpu as pltpu


def _heatmap_head_kernel(mask_ref, x_ref, wa_ref, ba_ref, wb_ref, bb_ref,
                         o_ref, tapsA_ref, tapsB_ref, *, W, HW_blk):
    """Fused HeatmapHead forward for one block of Nb images (lane-dense).

    mask_ref:  (9, HW_blk)      f32 per-tap boundary masks (center row unused)
    x_ref:     (Cin, HW_blk)    input: channels on sublanes, batch*pixels on lanes
    wa_ref:    (Cmid, 9*Cin)    bf16 layer-A weights, BN scale folded, taps stacked
    ba_ref:    (Cmid, 1)        f32 folded (conv bias + BN) bias, layer A
    wb_ref:    (Cout, 9*Cmid)   bf16 layer-B weights
    bb_ref:    (Cout, 1)        f32 folded bias, layer B
    o_ref:     (Cout, HW_blk)   f32 sigmoid heatmap output
    tapsA_ref: (9*Cin, HW_blk)  bf16 VMEM scratch: stacked taps of x
    tapsB_ref: (9*Cmid, HW_blk) bf16 VMEM scratch: stacked taps of hidden act
    """

    def build_taps(act, taps_ref):
        # act: (C, HW_blk) f32.  Tap t = kh*3+kw reads flat offset d = dh*W+dw
        # (np.roll semantics); wrapped / out-of-image positions are zeroed by
        # the precomputed masks.  The masked tap is stored straight into the
        # scratch slice, so the mask multiply's store doubles as the stacking
        # write (no concatenate / extra re-layout pass).
        c = act.shape[0]
        for kh in range(3):
            for kw in range(3):
                t = kh * 3 + kw
                d = (kh - 1) * W + (kw - 1)
                if d == 0:
                    tap = act                                    # center: all in-bounds
                else:
                    tap = pltpu.roll(act, (-d) % HW_blk, 1) * mask_ref[t:t + 1, :]
                taps_ref[t * c:(t + 1) * c, :] = tap.astype(taps_ref.dtype)

    def leaky_relu(y):
        return jnp.where(y > 0, y, 0.1 * y)

    x = x_ref[...].astype(jnp.float32)                           # (Cin, HW_blk)

    # Layer A: conv3x3 as ONE K=9*Cin bf16 matmul + folded bias + LeakyReLU.
    build_taps(x, tapsA_ref)
    h = jnp.dot(wa_ref[...], tapsA_ref[...],
                preferred_element_type=jnp.float32)              # (Cmid, HW_blk)
    h = leaky_relu(h + ba_ref[...])

    # Layer B: conv3x3 + folded bias + LeakyReLU + sigmoid.
    build_taps(h, tapsB_ref)
    y = jnp.dot(wb_ref[...], tapsB_ref[...],
                preferred_element_type=jnp.float32)              # (Cout, HW_blk)
    y = leaky_relu(y + bb_ref[...])
    # sigmoid = 1/(1+exp(-y)): exp on the EUP, approximate reciprocal (vrcp)
    # instead of a VALU divide -> essentially free epilogue.
    o_ref[...] = pl.reciprocal(1.0 + jnp.exp(-y), approx=True)   # lane-dense store


def _tap_masks(H, W, n_images):
    """(9, n_images*H*W) f32: 1.0 where tap (dh, dw) stays inside its own image."""
    pix = jnp.arange(H * W, dtype=jnp.int32)
    h_idx, w_idx = pix // W, pix % W
    rows = []
    for kh in range(3):
        for kw in range(3):
            dh, dw = kh - 1, kw - 1
            ok = ((h_idx + dh >= 0) & (h_idx + dh < H) &
                  (w_idx + dw >= 0) & (w_idx + dw < W))
            rows.append(ok.astype(jnp.float32))
    return jnp.tile(jnp.stack(rows, 0), (1, n_images))           # (9, n*HW)


def _pick_images_per_block(N, HW, Cin, Cmid, Cout, budget_bytes=8 << 20):
    """Largest divisor of N whose per-step activation footprint fits the budget."""
    per_image = HW * (4 * (Cin + Cout)            # x + out blocks (f32)
                      + 2 * 9 * (Cin + Cmid)      # tap scratches (bf16)
                      + 4 * 9)                    # masks (f32)
    nb = max(1, min(N, budget_bytes // max(per_image, 1)))
    while N % nb:
        nb -= 1
    return nb


def heatmap_head_forward(x_nchw, params):
    """x_nchw: (N, Cin, H, W) f32 -> (N, Cout, H, W), matching the PyTorch module."""
    N, Cin, H, W = x_nchw.shape
    HW = H * W
    Cmid = params["wA"].shape[0]
    Cout = params["wB"].shape[0]

    nb = _pick_images_per_block(N, HW, Cin, Cmid, Cout)
    hw_blk = nb * HW
    n_blocks = N // nb

    # NCHW -> (Cin, N*HW): one cheap XLA transpose; batch rides the lane axis.
    x_flat = jnp.transpose(x_nchw, (1, 0, 2, 3)).reshape(Cin, N * HW).astype(jnp.float32)
    masks = _tap_masks(H, W, nb)                                  # (9, hw_blk)

    # Explicit VMEM budget: double-buffered x/out blocks + resident masks and
    # weights + bf16 tap scratches; capped well under v7x's 64 MiB VMEM.
    vmem_bytes = (2 * (Cin + Cout) * hw_blk * 4 + 2 * 9 * hw_blk * 4
                  + 9 * (Cin * Cmid + Cmid * Cout) * 2 + (Cmid + Cout) * 4
                  + 9 * (Cin + Cmid) * hw_blk * 2)
    vmem_limit = int(min(max(2 * vmem_bytes, 16 << 20), 48 << 20))

    kernel = functools.partial(_heatmap_head_kernel, W=W, HW_blk=hw_blk)
    y_flat = pl.pallas_call(
        kernel,
        out_shape=jax.ShapeDtypeStruct((Cout, N * HW), jnp.float32),
        grid_spec=pltpu.PrefetchScalarGridSpec(
            num_scalar_prefetch=0,
            grid=(n_blocks,),
            in_specs=[
                pl.BlockSpec((9, hw_blk), lambda b: (0, 0)),      # masks (resident)
                pl.BlockSpec((Cin, hw_blk), lambda b: (0, b)),    # x block
                pl.BlockSpec((Cmid, 9 * Cin), lambda b: (0, 0)),  # wA (resident)
                pl.BlockSpec((Cmid, 1), lambda b: (0, 0)),        # bA
                pl.BlockSpec((Cout, 9 * Cmid), lambda b: (0, 0)), # wB
                pl.BlockSpec((Cout, 1), lambda b: (0, 0)),        # bB
            ],
            out_specs=pl.BlockSpec((Cout, hw_blk), lambda b: (0, b)),
            scratch_shapes=[pltpu.VMEM((9 * Cin, hw_blk), jnp.bfloat16),
                            pltpu.VMEM((9 * Cmid, hw_blk), jnp.bfloat16)]),
        compiler_params=pltpu.CompilerParams(
            dimension_semantics=("arbitrary",),
            vmem_limit_bytes=vmem_limit),
    )(masks, x_flat, params["wA"], params["biasA"], params["wB"], params["biasB"])

    # (Cout, N*HW) -> NCHW (cheap reshape + transpose back).
    return jnp.transpose(y_flat.reshape(Cout, N, H, W), (1, 0, 2, 3))


heatmap_head_forward = jax.jit(heatmap_head_forward)


def _fold_bn_into_conv(w_pt, conv_bias, gamma, beta, mean, var, eps=1e-5):
    """Fold inference BatchNorm (and conv bias) into the conv weights/bias."""
    scale = gamma / jnp.sqrt(var + eps)
    w = w_pt * scale[:, None, None, None]
    b = beta + (conv_bias - mean) * scale
    return w.astype(jnp.float32), b.astype(jnp.float32)


def _stack_taps(w):
    """(O, I, 3, 3) -> (O, 9*I); second axis ordered (kh, kw, i) so it matches
    the in-kernel tap stacking taps[(kh*3+kw)*I + i, :]."""
    O, I = w.shape[0], w.shape[1]
    return jnp.transpose(w, (0, 2, 3, 1)).reshape(O, 9 * I)


def make_heatmap_head_params(key, in_channels, mid_channels, out_channels):
    ks = jax.random.split(key, 4)
    # PyTorch-layout conv weights (Cout, Cin, 3, 3) and biases.
    wA_pt = 0.1 * jax.random.normal(ks[0], (mid_channels, in_channels, 3, 3), jnp.float32)
    bA = 0.05 * jax.random.normal(ks[1], (mid_channels,), jnp.float32)
    wB_pt = 0.1 * jax.random.normal(ks[2], (out_channels, mid_channels, 3, 3), jnp.float32)
    bB = 0.05 * jax.random.normal(ks[3], (out_channels,), jnp.float32)

    # Deterministic inference-mode BatchNorm params (running stats).
    gA = jnp.linspace(0.9, 1.1, mid_channels, dtype=jnp.float32)
    betaA = jnp.linspace(-0.1, 0.1, mid_channels, dtype=jnp.float32)
    meanA = jnp.linspace(-0.05, 0.05, mid_channels, dtype=jnp.float32)
    varA = jnp.linspace(0.8, 1.2, mid_channels, dtype=jnp.float32)

    gB = jnp.linspace(0.95, 1.05, out_channels, dtype=jnp.float32)
    betaB = jnp.linspace(-0.05, 0.05, out_channels, dtype=jnp.float32)
    meanB = jnp.linspace(-0.02, 0.02, out_channels, dtype=jnp.float32)
    varB = jnp.linspace(0.9, 1.1, out_channels, dtype=jnp.float32)

    wA_f, biasA = _fold_bn_into_conv(wA_pt, bA, gA, betaA, meanA, varA)
    wB_f, biasB = _fold_bn_into_conv(wB_pt, bB, gB, betaB, meanB, varB)

    # Kernel weights: BN-folded, tap-stacked, bf16 (full MXU rate, f32 accum).
    params = dict(
        wA=_stack_taps(wA_f).astype(jnp.bfloat16), biasA=biasA.reshape(-1, 1),
        wB=_stack_taps(wB_f).astype(jnp.bfloat16), biasB=biasB.reshape(-1, 1),
    )
    # Reference uses the same bf16-rounded folded weights (cast back to f32) so
    # the comparison isolates kernel-side error (bf16 activations, approx recip).
    ref_params = dict(
        wA=wA_f.astype(jnp.bfloat16).astype(jnp.float32), biasA=biasA,
        wB=wB_f.astype(jnp.bfloat16).astype(jnp.float32), biasB=biasB,
    )
    return params, ref_params


def reference_forward(x_nchw, ref_params):
    """Pure-JAX reference (XLA conv) of the PyTorch HeatmapHead forward,
    with inference BatchNorm folded into the conv (mathematically exact)."""
    def layer(x, w, bias, sigmoid):
        y = jax.lax.conv_general_dilated(
            x, w, window_strides=(1, 1), padding=((1, 1), (1, 1)),
            dimension_numbers=("NCHW", "OIHW", "NCHW"),
            precision=jax.lax.Precision.HIGHEST)
        y = y + bias[None, :, None, None]
        y = jnp.where(y > 0, y, 0.1 * y)          # LeakyReLU(0.1)
        if sigmoid:
            y = 1.0 / (1.0 + jnp.exp(-y))
        return y

    h = layer(x_nchw, ref_params["wA"], ref_params["biasA"], False)
    return layer(h, ref_params["wB"], ref_params["biasB"], True)


if __name__ == "__main__":
    key = jax.random.PRNGKey(0)
    k_x, k_p = jax.random.split(key)

    N, Cin, Cmid, Cout, HWdim = 2, 4, 8, 4, 16
    x = jax.random.normal(k_x, (N, Cin, HWdim, HWdim), jnp.float32)   # NCHW input
    params, ref_params = make_heatmap_head_params(k_p, Cin, Cmid, Cout)

    out = jax.block_until_ready(heatmap_head_forward(x, params))

    assert out.shape == (N, Cout, HWdim, HWdim)
    assert bool(jnp.all(jnp.isfinite(out)))
    # approx-reciprocal sigmoid may overshoot 1.0 by ~2^-12; allow tiny slack.
    assert bool(jnp.all((out >= 0.0) & (out <= 1.0 + 1e-3)))

    ref = reference_forward(x, ref_params)
    max_err = float(jnp.max(jnp.abs(out - ref)))
    # bf16 matmul operands + approx reciprocal -> keep a comfortable tolerance.
    assert bool(jnp.allclose(out, ref, atol=2e-2, rtol=2e-2)), max_err

    print("KERNEL_OK")
</pallas_src>

<mosaic_0001>
module attributes {stable_mosaic.version = 11 : i64} {
  func.func @_heatmap_head_kernel(%arg0: i32, %arg1: memref<9x512xf32, #tpu.memory_space<vmem>>, %arg2: memref<4x512xf32, #tpu.memory_space<vmem>>, %arg3: memref<8x36xbf16, #tpu.memory_space<vmem>>, %arg4: memref<8x1xf32, #tpu.memory_space<vmem>>, %arg5: memref<4x72xbf16, #tpu.memory_space<vmem>>, %arg6: memref<4x1xf32, #tpu.memory_space<vmem>>, %arg7: memref<4x512xf32, #tpu.memory_space<vmem>>, %arg8: memref<36x512xbf16, #tpu.memory_space<vmem>>, %arg9: memref<72x512xbf16, #tpu.memory_space<vmem>>) attributes {dimension_semantics = [#tpu.dimension_semantics<arbitrary>], iteration_bounds = array<i64: 1>, scalar_prefetch = 0 : i64, scratch_operands = 2 : i64, tpu.core_type = #tpu.core_type<tc>, window_params = [{pipeline_mode = #tpu.pipeline_mode<synchronous>, transform_indices = @transform_0, window_bounds = array<i64: 9, 512>}, {transform_indices = @transform_1, window_bounds = array<i64: 4, 512>}, {pipeline_mode = #tpu.pipeline_mode<synchronous>, transform_indices = @transform_2, window_bounds = array<i64: 8, 36>}, {pipeline_mode = #tpu.pipeline_mode<synchronous>, transform_indices = @transform_3, window_bounds = array<i64: 8, 1>}, {pipeline_mode = #tpu.pipeline_mode<synchronous>, transform_indices = @transform_4, window_bounds = array<i64: 4, 72>}, {pipeline_mode = #tpu.pipeline_mode<synchronous>, transform_indices = @transform_5, window_bounds = array<i64: 4, 1>}, {transform_indices = @transform_6, window_bounds = array<i64: 4, 512>}]} {
    %c0 = arith.constant 0 : index
    %c0_0 = arith.constant 0 : index
    %0 = vector.load %arg2[%c0, %c0_0] : memref<4x512xf32, #tpu.memory_space<vmem>>, vector<4x512xf32>
    %c17_i32 = arith.constant 17 : i32
    %1 = tpu.dynamic_rotate %0 by %c17_i32 dim 1 : vector<4x512xf32>, i32 -> vector<4x512xf32>
    %c0_1 = arith.constant 0 : index
    %c0_2 = arith.constant 0 : index
    %2 = vector.load %arg1[%c0_1, %c0_2] : memref<9x512xf32, #tpu.memory_space<vmem>>, vector<1x512xf32>
    %3 = vector.broadcast %2 : vector<1x512xf32> to vector<4x512xf32>
    %4 = arith.mulf %1, %3 : vector<4x512xf32>
    %5 = arith.truncf %4 : vector<4x512xf32> to vector<4x512xbf16>
    %c0_3 = arith.constant 0 : index
    %c0_4 = arith.constant 0 : index
    %6 = vector.load %arg8[%c0_3, %c0_4] : memref<36x512xbf16, #tpu.memory_space<vmem>>, vector<4x512xbf16>
    tpu.vector_store %arg8[%c0_3, %c0_4], %5 {strides = array<i32>} : memref<36x512xbf16, #tpu.memory_space<vmem>>, vector<4x512xbf16>,
    %c16_i32 = arith.constant 16 : i32
    %7 = tpu.dynamic_rotate %0 by %c16_i32 dim 1 : vector<4x512xf32>, i32 -> vector<4x512xf32>
    %c1 = arith.constant 1 : index
    %c0_5 = arith.constant 0 : index
    %8 = vector.load %arg1[%c1, %c0_5] : memref<9x512xf32, #tpu.memory_space<vmem>>, vector<1x512xf32>
    %9 = vector.broadcast %8 : vector<1x512xf32> to vector<4x512xf32>
    %10 = arith.mulf %7, %9 : vector<4x512xf32>
    %11 = arith.truncf %10 : vector<4x512xf32> to vector<4x512xbf16>
    %c4 = arith.constant 4 : index
    %c0_6 = arith.constant 0 : index
    %12 = vector.load %arg8[%c4, %c0_6] : memref<36x512xbf16, #tpu.memory_space<vmem>>, vector<4x512xbf16>
    tpu.vector_store %arg8[%c4, %c0_6], %11 {strides = array<i32>} : memref<36x512xbf16, #tpu.memory_space<vmem>>, vector<4x512xbf16>,
    %c15_i32 = arith.constant 15 : i32
    %13 = tpu.dynamic_rotate %0 by %c15_i32 dim 1 : vector<4x512xf32>, i32 -> vector<4x512xf32>
    %c2 = arith.constant 2 : index
    %c0_7 = arith.constant 0 : index
    %14 = vector.load %arg1[%c2, %c0_7] : memref<9x512xf32, #tpu.memory_space<vmem>>, vector<1x512xf32>
    %15 = vector.broadcast %14 : vector<1x512xf32> to vector<4x512xf32>
    %16 = arith.mulf %13, %15 : vector<4x512xf32>
    %17 = arith.truncf %16 : vector<4x512xf32> to vector<4x512xbf16>
    %c8 = arith.constant 8 : index
    %c0_8 = arith.constant 0 : index
    %18 = vector.load %arg8[%c8, %c0_8] : memref<36x512xbf16, #tpu.memory_space<vmem>>, vector<4x512xbf16>
    tpu.vector_store %arg8[%c8, %c0_8], %17 {strides = array<i32>} : memref<36x512xbf16, #tpu.memory_space<vmem>>, vector<4x512xbf16>,
    %c1_i32 = arith.constant 1 : i32
    %19 = tpu.dynamic_rotate %0 by %c1_i32 dim 1 : vector<4x512xf32>, i32 -> vector<4x512xf32>
    %c3 = arith.constant 3 : index
    %c0_9 = arith.constant 0 : index
    %20 = vector.load %arg1[%c3, %c0_9] : memref<9x512xf32, #tpu.memory_space<vmem>>, vector<1x512xf32>
    %21 = vector.broadcast %20 : vector<1x512xf32> to vector<4x512xf32>
    %22 = arith.mulf %19, %21 : vector<4x512xf32>
    %23 = arith.truncf %22 : vector<4x512xf32> to vector<4x512xbf16>
    %c12 = arith.constant 12 : index
    %c0_10 = arith.constant 0 : index
    %24 = vector.load %arg8[%c12, %c0_10] : memref<36x512xbf16, #tpu.memory_space<vmem>>, vector<4x512xbf16>
    tpu.vector_store %arg8[%c12, %c0_10], %23 {strides = array<i32>} : memref<36x512xbf16, #tpu.memory_space<vmem>>, vector<4x512xbf16>,
    %25 = arith.truncf %0 : vector<4x512xf32> to vector<4x512xbf16>
    %c16 = arith.constant 16 : index
    %c0_11 = arith.constant 0 : index
    %26 = vector.load %arg8[%c16, %c0_11] : memref<36x512xbf16, #tpu.memory_space<vmem>>, vector<4x512xbf16>
    tpu.vector_store %arg8[%c16, %c0_11], %25 {strides = array<i32>} : memref<36x512xbf16, #tpu.memory_space<vmem>>, vector<4x512xbf16>,
    %c511_i32 = arith.constant 511 : i32
    %27 = tpu.dynamic_rotate %0 by %c511_i32 dim 1 : vector<4x512xf32>, i32 -> vector<4x512xf32>
    %c5 = arith.constant 5 : index
    %c0_12 = arith.constant 0 : index
    %28 = vector.load %arg1[%c5, %c0_12] : memref<9x512xf32, #tpu.memory_space<vmem>>, vector<1x512xf32>
    %29 = vector.broadcast %28 : vector<1x512xf32> to vector<4x512xf32>
    %30 = arith.mulf %27, %29 : vector<4x512xf32>
    %31 = arith.truncf %30 : vector<4x512xf32> to vector<4x512xbf16>
    %c20 = arith.constant 20 : index
    %c0_13 = arith.constant 0 : index
    %32 = vector.load %arg8[%c20, %c0_13] : memref<36x512xbf16, #tpu.memory_space<vmem>>, vector<4x512xbf16>
    tpu.vector_store %arg8[%c20, %c0_13], %31 {strides = array<i32>} : memref<36x512xbf16, #tpu.memory_space<vmem>>, vector<4x512xbf16>,
    %c497_i32 = arith.constant 497 : i32
    %33 = tpu.dynamic_rotate %0 by %c497_i32 dim 1 : vector<4x512xf32>, i32 -> vector<4x512xf32>
    %c6 = arith.constant 6 : index
    %c0_14 = arith.constant 0 : index
    %34 = vector.load %arg1[%c6, %c0_14] : memref<9x512xf32, #tpu.memory_space<vmem>>, vector<1x512xf32>
    %35 = vector.broadcast %34 : vector<1x512xf32> to vector<4x512xf32>
    %36 = arith.mulf %33, %35 : vector<4x512xf32>
    %37 = arith.truncf %36 : vector<4x512xf32> to vector<4x512xbf16>
    %c24 = arith.constant 24 : index
    %c0_15 = arith.constant 0 : index
    %38 = vector.load %arg8[%c24, %c0_15] : memref<36x512xbf16, #tpu.memory_space<vmem>>, vector<4x512xbf16>
    tpu.vector_store %arg8[%c24, %c0_15], %37 {strides = array<i32>} : memref<36x512xbf16, #tpu.memory_space<vmem>>, vector<4x512xbf16>,
    %c496_i32 = arith.constant 496 : i32
    %39 = tpu.dynamic_rotate %0 by %c496_i32 dim 1 : vector<4x512xf32>, i32 -> vector<4x512xf32>
    %c7 = arith.constant 7 : index
    %c0_16 = arith.constant 0 : index
    %40 = vector.load %arg1[%c7, %c0_16] : memref<9x512xf32, #tpu.memory_space<vmem>>, vector<1x512xf32>
    %41 = vector.broadcast %40 : vector<1x512xf32> to vector<4x512xf32>
    %42 = arith.mulf %39, %41 : vector<4x512xf32>
    %43 = arith.truncf %42 : vector<4x512xf32> to vector<4x512xbf16>
    %c28 = arith.constant 28 : index
    %c0_17 = arith.constant 0 : index
    %44 = vector.load %arg8[%c28, %c0_17] : memref<36x512xbf16, #tpu.memory_space<vmem>>, vector<4x512xbf16>
    tpu.vector_store %arg8[%c28, %c0_17], %43 {strides = array<i32>} : memref<36x512xbf16, #tpu.memory_space<vmem>>, vector<4x512xbf16>,
    %c495_i32 = arith.constant 495 : i32
    %45 = tpu.dynamic_rotate %0 by %c495_i32 dim 1 : vector<4x512xf32>, i32 -> vector<4x512xf32>
    %c8_18 = arith.constant 8 : index
    %c0_19 = arith.constant 0 : index
    %46 = vector.load %arg1[%c8_18, %c0_19] : memref<9x512xf32, #tpu.memory_space<vmem>>, vector<1x512xf32>
    %47 = vector.broadcast %46 : vector<1x512xf32> to vector<4x512xf32>
    %48 = arith.mulf %45, %47 : vector<4x512xf32>
    %49 = arith.truncf %48 : vector<4x512xf32> to vector<4x512xbf16>
    %c32 = arith.constant 32 : index
    %c0_20 = arith.constant 0 : index
    %50 = vector.load %arg8[%c32, %c0_20] : memref<36x512xbf16, #tpu.memory_space<vmem>>, vector<4x512xbf16>
    tpu.vector_store %arg8[%c32, %c0_20], %49 {strides = array<i32>} : memref<36x512xbf16, #tpu.memory_space<vmem>>, vector<4x512xbf16>,
    %c0_21 = arith.constant 0 : index
    %c0_22 = arith.constant 0 : index
    %51 = vector.load %arg3[%c0_21, %c0_22] : memref<8x36xbf16, #tpu.memory_space<vmem>>, vector<8x36xbf16>
    %c0_23 = arith.constant 0 : index
    %c0_24 = arith.constant 0 : index
    %52 = vector.load %arg8[%c0_23, %c0_24] : memref<36x512xbf16, #tpu.memory_space<vmem>>, vector<36x512xbf16>
    %cst = arith.constant dense<0.000000e+00> : vector<8x512xf32>
    %53 = tpu.matmul %51, %52, %cst {dimension_numbers = #tpu.dot_dimension_numbers<[1], [0], [0], [1], [0, 0, 1, 1], [], []>} : vector<8x36xbf16>, vector<36x512xbf16>, vector<8x512xf32> -> vector<8x512xf32>
    %c0_25 = arith.constant 0 : index
    %c0_26 = arith.constant 0 : index
    %54 = vector.load %arg4[%c0_25, %c0_26] : memref<8x1xf32, #tpu.memory_space<vmem>>, vector<8x1xf32>
    %55 = vector.broadcast %54 : vector<8x1xf32> to vector<8x512xf32>
    %56 = arith.addf %53, %55 : vector<8x512xf32>
    %cst_27 = arith.constant 0.000000e+00 : f32
    %57 = vector.broadcast %cst_27 : f32 to vector<8x512xf32>
    %58 = arith.cmpf ogt, %56, %57 : vector<8x512xf32>
    %cst_28 = arith.constant 1.000000e-01 : f32
    %59 = vector.broadcast %cst_28 : f32 to vector<8x512xf32>
    %60 = arith.mulf %59, %56 : vector<8x512xf32>
    %61 = arith.select %58, %56, %60 : vector<8x512xi1>, vector<8x512xf32>
    %c17_i32_29 = arith.constant 17 : i32
    %62 = tpu.dynamic_rotate %61 by %c17_i32_29 dim 1 : vector<8x512xf32>, i32 -> vector<8x512xf32>
    %c0_30 = arith.constant 0 : index
    %c0_31 = arith.constant 0 : index
    %63 = vector.load %arg1[%c0_30, %c0_31] : memref<9x512xf32, #tpu.memory_space<vmem>>, vector<1x512xf32>
    %64 = vector.broadcast %63 : vector<1x512xf32> to vector<8x512xf32>
    %65 = arith.mulf %62, %64 : vector<8x512xf32>
    %66 = arith.truncf %65 : vector<8x512xf32> to vector<8x512xbf16>
    %c0_32 = arith.constant 0 : index
    %c0_33 = arith.constant 0 : index
    %67 = vector.load %arg9[%c0_32, %c0_33] : memref<72x512xbf16, #tpu.memory_space<vmem>>, vector<8x512xbf16>
    tpu.vector_store %arg9[%c0_32, %c0_33], %66 {strides = array<i32>} : memref<72x512xbf16, #tpu.memory_space<vmem>>, vector<8x512xbf16>,
    %c16_i32_34 = arith.constant 16 : i32
    %68 = tpu.dynamic_rotate %61 by %c16_i32_34 dim 1 : vector<8x512xf32>, i32 -> vector<8x512xf32>
    %c1_35 = arith.constant 1 : index
    %c0_36 = arith.constant 0 : index
    %69 = vector.load %arg1[%c1_35, %c0_36] : memref<9x512xf32, #tpu.memory_space<vmem>>, vector<1x512xf32>
    %70 = vector.broadcast %69 : vector<1x512xf32> to vector<8x512xf32>
    %71 = arith.mulf %68, %70 : vector<8x512xf32>
    %72 = arith.truncf %71 : vector<8x512xf32> to vector<8x512xbf16>
    %c8_37 = arith.constant 8 : index
    %c0_38 = arith.constant 0 : index
    %73 = vector.load %arg9[%c8_37, %c0_38] : memref<72x512xbf16, #tpu.memory_space<vmem>>, vector<8x512xbf16>
    tpu.vector_store %arg9[%c8_37, %c0_38], %72 {strides = array<i32>} : memref<72x512xbf16, #tpu.memory_space<vmem>>, vector<8x512xbf16>,
    %c15_i32_39 = arith.constant 15 : i32
    %74 = tpu.dynamic_rotate %61 by %c15_i32_39 dim 1 : vector<8x512xf32>, i32 -> vector<8x512xf32>
    %c2_40 = arith.constant 2 : index
    %c0_41 = arith.constant 0 : index
    %75 = vector.load %arg1[%c2_40, %c0_41] : memref<9x512xf32, #tpu.memory_space<vmem>>, vector<1x512xf32>
    %76 = vector.broadcast %75 : vector<1x512xf32> to vector<8x512xf32>
    %77 = arith.mulf %74, %76 : vector<8x512xf32>
    %78 = arith.truncf %77 : vector<8x512xf32> to vector<8x512xbf16>
    %c16_42 = arith.constant 16 : index
    %c0_43 = arith.constant 0 : index
    %79 = vector.load %arg9[%c16_42, %c0_43] : memref<72x512xbf16, #tpu.memory_space<vmem>>, vector<8x512xbf16>
    tpu.vector_store %arg9[%c16_42, %c0_43], %78 {strides = array<i32>} : memref<72x512xbf16, #tpu.memory_space<vmem>>, vector<8x512xbf16>,
    %c1_i32_44 = arith.constant 1 : i32
    %80 = tpu.dynamic_rotate %61 by %c1_i32_44 dim 1 : vector<8x512xf32>, i32 -> vector<8x512xf32>
    %c3_45 = arith.constant 3 : index
    %c0_46 = arith.constant 0 : index
    %81 = vector.load %arg1[%c3_45, %c0_46] : memref<9x512xf32, #tpu.memory_space<vmem>>, vector<1x512xf32>
    %82 = vector.broadcast %81 : vector<1x512xf32> to vector<8x512xf32>
    %83 = arith.mulf %80, %82 : vector<8x512xf32>
    %84 = arith.truncf %83 : vector<8x512xf32> to vector<8x512xbf16>
    %c24_47 = arith.constant 24 : index
    %c0_48 = arith.constant 0 : index
    %85 = vector.load %arg9[%c24_47, %c0_48] : memref<72x512xbf16, #tpu.memory_space<vmem>>, vector<8x512xbf16>
    tpu.vector_store %arg9[%c24_47, %c0_48], %84 {strides = array<i32>} : memref<72x512xbf16, #tpu.memory_space<vmem>>, vector<8x512xbf16>,
    %86 = arith.truncf %61 : vector<8x512xf32> to vector<8x512xbf16>
    %c32_49 = arith.constant 32 : index
    %c0_50 = arith.constant 0 : index
    %87 = vector.load %arg9[%c32_49, %c0_50] : memref<72x512xbf16, #tpu.memory_space<vmem>>, vector<8x512xbf16>
    tpu.vector_store %arg9[%c32_49, %c0_50], %86 {strides = array<i32>} : memref<72x512xbf16, #tpu.memory_space<vmem>>, vector<8x512xbf16>,
    %c511_i32_51 = arith.constant 511 : i32
    %88 = tpu.dynamic_rotate %61 by %c511_i32_51 dim 1 : vector<8x512xf32>, i32 -> vector<8x512xf32>
    %c5_52 = arith.constant 5 : index
    %c0_53 = arith.constant 0 : index
    %89 = vector.load %arg1[%c5_52, %c0_53] : memref<9x512xf32, #tpu.memory_space<vmem>>, vector<1x512xf32>
    %90 = vector.broadcast %89 : vector<1x512xf32> to vector<8x512xf32>
    %91 = arith.mulf %88, %90 : vector<8x512xf32>
    %92 = arith.truncf %91 : vector<8x512xf32> to vector<8x512xbf16>
    %c40 = arith.constant 40 : index
    %c0_54 = arith.constant 0 : index
    %93 = vector.load %arg9[%c40, %c0_54] : memref<72x512xbf16, #tpu.memory_space<vmem>>, vector<8x512xbf16>
    tpu.vector_store %arg9[%c40, %c0_54], %92 {strides = array<i32>} : memref<72x512xbf16, #tpu.memory_space<vmem>>, vector<8x512xbf16>,
    %c497_i32_55 = arith.constant 497 : i32
    %94 = tpu.dynamic_rotate %61 by %c497_i32_55 dim 1 : vector<8x512xf32>, i32 -> vector<8x512xf32>
    %c6_56 = arith.constant 6 : index
    %c0_57 = arith.constant 0 : index
    %95 = vector.load %arg1[%c6_56, %c0_57] : memref<9x512xf32, #tpu.memory_space<vmem>>, vector<1x512xf32>
    %96 = vector.broadcast %95 : vector<1x512xf32> to vector<8x512xf32>
    %97 = arith.mulf %94, %96 : vector<8x512xf32>
    %98 = arith.truncf %97 : vector<8x512xf32> to vector<8x512xbf16>
    %c48 = arith.constant 48 : index
    %c0_58 = arith.constant 0 : index
    %99 = vector.load %arg9[%c48, %c0_58] : memref<72x512xbf16, #tpu.memory_space<vmem>>, vector<8x512xbf16>
    tpu.vector_store %arg9[%c48, %c0_58], %98 {strides = array<i32>} : memref<72x512xbf16, #tpu.memory_space<vmem>>, vector<8x512xbf16>,
    %c496_i32_59 = arith.constant 496 : i32
    %100 = tpu.dynamic_rotate %61 by %c496_i32_59 dim 1 : vector<8x512xf32>, i32 -> vector<8x512xf32>
    %c7_60 = arith.constant 7 : index
    %c0_61 = arith.constant 0 : index
    %101 = vector.load %arg1[%c7_60, %c0_61] : memref<9x512xf32, #tpu.memory_space<vmem>>, vector<1x512xf32>
    %102 = vector.broadcast %101 : vector<1x512xf32> to vector<8x512xf32>
    %103 = arith.mulf %100, %102 : vector<8x512xf32>
    %104 = arith.truncf %103 : vector<8x512xf32> to vector<8x512xbf16>
    %c56 = arith.constant 56 : index
    %c0_62 = arith.constant 0 : index
    %105 = vector.load %arg9[%c56, %c0_62] : memref<72x512xbf16, #tpu.memory_space<vmem>>, vector<8x512xbf16>
    tpu.vector_store %arg9[%c56, %c0_62], %104 {strides = array<i32>} : memref<72x512xbf16, #tpu.memory_space<vmem>>, vector<8x512xbf16>,
    %c495_i32_63 = arith.constant 495 : i32
    %106 = tpu.dynamic_rotate %61 by %c495_i32_63 dim 1 : vector<8x512xf32>, i32 -> vector<8x512xf32>
    %c8_64 = arith.constant 8 : index
    %c0_65 = arith.constant 0 : index
    %107 = vector.load %arg1[%c8_64, %c0_65] : memref<9x512xf32, #tpu.memory_space<vmem>>, vector<1x512xf32>
    %108 = vector.broadcast %107 : vector<1x512xf32> to vector<8x512xf32>
    %109 = arith.mulf %106, %108 : vector<8x512xf32>
    %110 = arith.truncf %109 : vector<8x512xf32> to vector<8x512xbf16>
    %c64 = arith.constant 64 : index
    %c0_66 = arith.constant 0 : index
    %111 = vector.load %arg9[%c64, %c0_66] : memref<72x512xbf16, #tpu.memory_space<vmem>>, vector<8x512xbf16>
    tpu.vector_store %arg9[%c64, %c0_66], %110 {strides = array<i32>} : memref<72x512xbf16, #tpu.memory_space<vmem>>, vector<8x512xbf16>,
    %c0_67 = arith.constant 0 : index
    %c0_68 = arith.constant 0 : index
    %112 = vector.load %arg5[%c0_67, %c0_68] : memref<4x72xbf16, #tpu.memory_space<vmem>>, vector<4x72xbf16>
    %c0_69 = arith.constant 0 : index
    %c0_70 = arith.constant 0 : index
    %113 = vector.load %arg9[%c0_69, %c0_70] : memref<72x512xbf16, #tpu.memory_space<vmem>>, vector<72x512xbf16>
    %cst_71 = arith.constant dense<0.000000e+00> : vector<4x512xf32>
    %114 = tpu.matmul %112, %113, %cst_71 {dimension_numbers = #tpu.dot_dimension_numbers<[1], [0], [0], [1], [0, 0, 1, 1], [], []>} : vector<4x72xbf16>, vector<72x512xbf16>, vector<4x512xf32> -> vector<4x512xf32>
    %c0_72 = arith.constant 0 : index
    %c0_73 = arith.constant 0 : index
    %115 = vector.load %arg6[%c0_72, %c0_73] : memref<4x1xf32, #tpu.memory_space<vmem>>, vector<4x1xf32>
    %116 = vector.broadcast %115 : vector<4x1xf32> to vector<4x512xf32>
    %117 = arith.addf %114, %116 : vector<4x512xf32>
    %cst_74 = arith.constant 0.000000e+00 : f32
    %118 = vector.broadcast %cst_74 : f32 to vector<4x512xf32>
    %119 = arith.cmpf ogt, %117, %118 : vector<4x512xf32>
    %cst_75 = arith.constant 1.000000e-01 : f32
    %120 = vector.broadcast %cst_75 : f32 to vector<4x512xf32>
    %121 = arith.mulf %120, %117 : vector<4x512xf32>
    %122 = arith.select %119, %117, %121 : vector<4x512xi1>, vector<4x512xf32>
    %cst_76 = arith.constant 0.000000e+00 : f32
    %123 = vector.broadcast %cst_76 : f32 to vector<4x512xf32>
    %124 = arith.subf %123, %122 : vector<4x512xf32>
    %125 = math.exp %124 : vector<4x512xf32>
    %cst_77 = arith.constant 1.000000e+00 : f32
    %126 = vector.broadcast %cst_77 : f32 to vector<4x512xf32>
    %127 = arith.addf %126, %125 : vector<4x512xf32>
    %128 = tpu.reciprocal %127 {approx = true} : vector<4x512xf32> -> vector<4x512xf32>
    %c0_78 = arith.constant 0 : index
    %c0_79 = arith.constant 0 : index
    %129 = vector.load %arg7[%c0_78, %c0_79] : memref<4x512xf32, #tpu.memory_space<vmem>>, vector<4x512xf32>
    tpu.vector_store %arg7[%c0_78, %c0_79], %128 {strides = array<i32>} : memref<4x512xf32, #tpu.memory_space<vmem>>, vector<4x512xf32>,
    return
  }
  func.func @transform_0(%arg0: i32) -> (i32, i32) {
    %c0_i32 = arith.constant 0 : i32
    %c0_i32_0 = arith.constant 0 : i32
    %c0_i32_1 = arith.constant 0 : i32
    return %c0_i32, %c0_i32_0 : i32, i32
  }
  func.func @transform_1(%arg0: i32) -> (i32, i32) {
    %c0_i32 = arith.constant 0 : i32
    %c0_i32_0 = arith.constant 0 : i32
    return %c0_i32, %arg0 : i32, i32
  }
  func.func @transform_2(%arg0: i32) -> (i32, i32) {
    %c0_i32 = arith.constant 0 : i32
    %c0_i32_0 = arith.constant 0 : i32
    %c0_i32_1 = arith.constant 0 : i32
    return %c0_i32, %c0_i32_0 : i32, i32
  }
  func.func @transform_3(%arg0: i32) -> (i32, i32) {
    %c0_i32 = arith.constant 0 : i32
    %c0_i32_0 = arith.constant 0 : i32
    %c0_i32_1 = arith.constant 0 : i32
    return %c0_i32, %c0_i32_0 : i32, i32
  }
  func.func @transform_4(%arg0: i32) -> (i32, i32) {
    %c0_i32 = arith.constant 0 : i32
    %c0_i32_0 = arith.constant 0 : i32
    %c0_i32_1 = arith.constant 0 : i32
    return %c0_i32, %c0_i32_0 : i32, i32
  }
  func.func @transform_5(%arg0: i32) -> (i32, i32) {
    %c0_i32 = arith.constant 0 : i32
    %c0_i32_0 = arith.constant 0 : i32
    %c0_i32_1 = arith.constant 0 : i32
    return %c0_i32, %c0_i32_0 : i32, i32
  }
  func.func @transform_6(%arg0: i32) -> (i32, i32) {
    %c0_i32 = arith.constant 0 : i32
    %c0_i32_0 = arith.constant 0 : i32
    return %c0_i32, %arg0 : i32, i32
  }
}

</mosaic_0001>

<bundles_post_ra>
// kernel: heatmap_head_forward.1
= control target key start
LH: loop header
LB: loop body
LE: loop exit
PB: predicated region body
PF: predicated region fallthrough
CT: control target
= control target key end

     0   :  { %s1617_s25 = smov 16   ;;  %s1618_s26 = smov 1   ;;  %v1625_v6 = vmov 0   ;;  %v40_v8 = vlaneseq  ;;  %vm594_vm8 = vcmask 1041408   ;;  %vm590_vm9 = vcmask 293888   ;;  %s2060_s1 = inlined_call_operand.vmem [shape: f32[4,512], index: 1, kind: input, shape index: {}]   ;;  %s2061_s3 = inlined_call_operand.vmem [shape: f32[8,1], index: 3, kind: input, shape index: {}]   ;;  %s2062_s0 = inlined_call_operand.vmem [shape: f32[9,512], index: 0, kind: input, shape index: {}]   ;;  %s2063_s2 = inlined_call_operand.vmem [shape: bf16[8,36], index: 2, kind: input, shape index: {}]   ;;  %s2064_s5 = inlined_call_operand.vmem [shape: f32[4,1], index: 5, kind: input, shape index: {}]   ;;  %s2065_s4 = inlined_call_operand.vmem [shape: bf16[4,72], index: 4, kind: input, shape index: {}]   ;;  %s2066_s6 = inlined_call_operand.vmem [shape: f32[4,512], index: 6, kind: output, shape index: {}]  }
   0x1   :  { %v25_v0 = vld [vmem:[%s2060_s1 + $0x8] sm:$0xff]  ;;  %v24_v1 = vld [vmem:[%s2060_s1] sm:$0xff]  ;;  %s1619_s1 = smov 17   ;;  %s1620_s27 = smov 15   ;;  %639 = vmatprep.mubr.bf16.mxu0 %v1625_v6  ;;  %680 = vmatprep.mubr.bf16.mxu1 %v1625_v6  ;;  %vm1286_vm14 = vcmask 1043456   ;;  %vm1282_vm15 = vcmask 588800  }
   0x2   :  { %95 = vrot.lane.b32.xlu1 %v25_v0, %s1617_s25  ;;  %91 = vrot.lane.b32.xlu0 %v24_v1, %s1617_s25  ;;  %v29_v2 = vcombine.high %v25_v0, %v25_v0  ;;  %v28_v3 = vcombine.high %v24_v1, %v24_v1  ;;  %s1621_s28 = smov 127   ;;  %s1622_s29 = smov 112   ;;  %v534_v7 = vld [vmem:[%s2061_s3] sm:$0xff]  ;;  %v50_v9 = vshrl.u32 %v40_v8, 7  ;;  %v1705_v10 = vand.u32 127, %v40_v8 }
   0x3   :  { %s1623_s30 = smov 113   ;;  %s1624_s7 = smov 111   ;;  %1582 = vset.pattern.permute.xlu0 %v1625_v6  ;;  %v1429_v15 = vld [vmem:[%s2062_s0 + $0x1] ss:$8 sm:$0xf] }
   0x4   :  { %v1525_v4 = vpack.c.bf16 %v28_v3, %v24_v1  ;;  %v1526_v5 = vpack.c.bf16 %v29_v2, %v25_v0  ;;  %v1707_v11 = vsub.s32 0, %v50_v9  ;;  %v1709_v12 = vsub.s32 1, %v50_v9  ;;  %v1435_v32 = vld [vmem:[%s2062_s0 + $0x3] ss:$8 sm:$0xf] }
   0x5   :  { %v1711_v13 = vsub.s32 2, %v50_v9  ;;  %v1713_v14 = vsub.s32 3, %v50_v9  ;;  %vm99_vm0 = vcmp.lt.s32.totalorder %v1705_v10, 16  ;;  %vm217_vm1 = vcmp.lt.s32.totalorder %v1705_v10, 1 }
   0x6   :  { %97 = vrot.lane.b32.xlu1 %v29_v2, %s1617_s25  ;;  %93 = vrot.lane.b32.xlu0 %v28_v3, %s1617_s25  ;;  %285 = vst [vmem:[#allocation2 + $0x20] sm:$0x33] %v1525_v4  ;;  %286 = vst [vmem:[#allocation2 + $0x28] sm:$0x33] %v1526_v5  ;;  %v110_v18 = vrot.slane %v1429_v15, %v1707_v11  ;;  %v114_v20 = vrot.slane %v1429_v15, %v1709_v12  ;;  %vm42_vm2 = vcmp.lt.s32.totalorder %v1705_v10, 17 }
   0x7   :  { %v122_v19 = vrot.slane %v1429_v15, %v1713_v14  ;;  %v118_v21 = vrot.slane %v1429_v15, %v1711_v13  ;;  %v232_v37 = vrot.slane %v1435_v32, %v1709_v12  ;;  %v228_v38 = vrot.slane %v1435_v32, %v1707_v11  ;;  %v47_v53 = vld [vmem:[%s2062_s0] ss:$8 sm:$0xf] }
   0x8   :  { %v236_v41 = vrot.slane %v1435_v32, %v1711_v13  ;;  %v240_v42 = vrot.slane %v1435_v32, %v1713_v14  ;;  %v56_v58 = vrot.slane %v47_v53, %v1709_v12  ;;  %v52_v59 = vrot.slane %v47_v53, %v1707_v11 }
   0x9   :  { %v60_v62 = vrot.slane %v47_v53, %v1711_v13  ;;  %v64_v63 = vrot.slane %v47_v53, %v1713_v14  ;;  %vm159_vm3 = vcmp.lt.s32.totalorder %v1705_v10, 15  ;;  %vm295_vm4 = vcmp.lt.s32.totalorder %v1705_v10, 127 }
   0xa   :  { %211 = vrot.lane.b32.xlu1 %v28_v3, %s1618_s26  ;;  %209 = vrot.lane.b32.xlu0 %v24_v1, %s1618_s26  ;;  %vm413_vm5 = vcmp.lt.s32.totalorder %v1705_v10, 112  ;;  %vm355_vm6 = vcmp.lt.s32.totalorder %v1705_v10, 113  ;;  %vm473_vm7 = vcmp.lt.s32.totalorder %v1705_v10, 111 }
   0xe   :  { %215 = vrot.lane.b32.xlu1 %v29_v2, %s1618_s26  ;;  %213 = vrot.lane.b32.xlu0 %v25_v0, %s1618_s26 }
  0x12   :  { %34 = vrot.lane.b32.xlu1 %v28_v3, %s1619_s1  ;;  %32 = vrot.lane.b32.xlu0 %v24_v1, %s1619_s1 }
  0x16   :  { %38 = vrot.lane.b32.xlu1 %v29_v2, %s1619_s1  ;;  %36 = vrot.lane.b32.xlu0 %v25_v0, %s1619_s1 }
  0x1a   :  { %153 = vrot.lane.b32.xlu1 %v28_v3, %s1620_s27  ;;  %151 = vrot.lane.b32.xlu0 %v24_v1, %s1620_s27 }
  0x1e   :  { %157 = vrot.lane.b32.xlu1 %v29_v2, %s1620_s27  ;;  %155 = vrot.lane.b32.xlu0 %v25_v0, %s1620_s27 }
  0x22   :  { %289 = vrot.lane.b32.xlu1 %v28_v3, %s1621_s28  ;;  %287 = vrot.lane.b32.xlu0 %v24_v1, %s1621_s28 }
  0x26   :  { %293 = vrot.lane.b32.xlu1 %v29_v2, %s1621_s28  ;;  %291 = vrot.lane.b32.xlu0 %v25_v0, %s1621_s28 }
  0x2a   :  { %407 = vrot.lane.b32.xlu1 %v28_v3, %s1622_s29  ;;  %405 = vrot.lane.b32.xlu0 %v24_v1, %s1622_s29 }
  0x2e   :  { %411 = vrot.lane.b32.xlu1 %v29_v2, %s1622_s29  ;;  %409 = vrot.lane.b32.xlu0 %v25_v0, %s1622_s29 }
  0x32   :  { %349 = vrot.lane.b32.xlu1 %v28_v3, %s1623_s30  ;;  %347 = vrot.lane.b32.xlu0 %v24_v1, %s1623_s30 }
  0x36   :  { %353 = vrot.lane.b32.xlu1 %v29_v2, %s1623_s30  ;;  %351 = vrot.lane.b32.xlu0 %v25_v0, %s1623_s30 }
  0x3a   :  { %467 = vrot.lane.b32.xlu1 %v28_v3, %s1624_s7  ;;  %465 = vrot.lane.b32.xlu0 %v24_v1, %s1624_s7 }
  0x3e   :  { %471 = vrot.lane.b32.xlu1 %v29_v2, %s1624_s7  ;;  %469 = vrot.lane.b32.xlu0 %v25_v0, %s1624_s7 }
  0x42   :  { %537 = vperm.xlu0 %1582, %v534_v7  }
  0x74   :  { %v96_v16 = vpop.permute.xlu1 %95  ;;  %v92_v17 = vpop.permute.xlu0 %91 }
  0x78   :  { %v98_v22 = vpop.permute.xlu1 %97  ;;  %v94_v23 = vpop.permute.xlu0 %93 }
  0x79   :  { %v100_v24 = vsel %vm99_vm0, %v96_v16, %v98_v22  ;;  %v103_v25 = vsel %vm99_vm0, %v98_v22, %v92_v17  ;;  %v101_v26 = vsel %vm99_vm0, %v94_v23, %v96_v16  ;;  %v102_v27 = vsel %vm99_vm0, %v92_v17, %v94_v23  ;;  %v1432_v16 = vld [vmem:[%s2062_s0 + $0x2] ss:$8 sm:$0xf] }
  0x7a   :  { %v127_v28 = vmul.f32 %v110_v18, %v103_v25  ;;  %v130_v29 = vmul.f32 %v122_v19, %v100_v24  ;;  %v128_v30 = vmul.f32 %v114_v20, %v102_v27  ;;  %v129_v31 = vmul.f32 %v118_v21, %v101_v26 }
  0x7b   :  { %v174_v21 = vrot.slane %v1432_v16, %v1709_v12  ;;  %v170_v22 = vrot.slane %v1432_v16, %v1707_v11  ;;  %v178_v23 = vrot.slane %v1432_v16, %v1711_v13  ;;  %v182_v24 = vrot.slane %v1432_v16, %v1713_v14 }
  0x7c   :  { %v1519_v33 = vpack.c.bf16 %v128_v30, %v127_v28  ;;  %v1520_v34 = vpack.c.bf16 %v130_v29, %v129_v31  ;;  %v212_v35 = vpop.permute.xlu1 %211  ;;  %v210_v36 = vpop.permute.xlu0 %209 }
  0x7d   :  { %v220_v43 = vsel %vm217_vm1, %v210_v36, %v212_v35 }
  0x7e   :  { %v145_v39 = vrot.slane %v1519_v33, 6  ;;  %v146_v40 = vrot.slane %v1520_v34, 6  ;;  %v246_v49 = vmul.f32 %v232_v37, %v220_v43 }
  0x80   :  { %149 = vst [vmem:[#allocation2] sm:$0xcc] %v145_v39  ;;  %150 = vst [vmem:[#allocation2 + $0x8] sm:$0xcc] %v146_v40  ;;  %v216_v44 = vpop.permute.xlu1 %215  ;;  %v214_v45 = vpop.permute.xlu0 %213 }
  0x81   :  { %v221_v46 = vsel %vm217_vm1, %v216_v44, %v210_v36  ;;  %v218_v47 = vsel %vm217_vm1, %v214_v45, %v216_v44  ;;  %v219_v48 = vsel %vm217_vm1, %v212_v35, %v214_v45  ;;  %v1440_v35 = vld [vmem:[%s2062_s0 + $0x5] ss:$8 sm:$0xf] }
  0x82   :  { %v245_v50 = vmul.f32 %v228_v38, %v221_v46  ;;  %v247_v51 = vmul.f32 %v236_v41, %v219_v48  ;;  %v248_v52 = vmul.f32 %v240_v42, %v218_v47  ;;  %v306_v40 = vrot.slane %v1440_v35, %v1707_v11 }
  0x83   :  { %v318_v41 = vrot.slane %v1440_v35, %v1713_v14  ;;  %v310_v42 = vrot.slane %v1440_v35, %v1709_v12  ;;  %v314_v43 = vrot.slane %v1440_v35, %v1711_v13 }
  0x84   :  { %v1523_v54 = vpack.c.bf16 %v246_v49, %v245_v50  ;;  %v1524_v55 = vpack.c.bf16 %v248_v52, %v247_v51  ;;  %v35_v56 = vpop.permute.xlu1 %34  ;;  %v33_v57 = vpop.permute.xlu0 %32 }
  0x85   :  { %v45_v0 = vsel %vm42_vm2, %v33_v57, %v35_v56 }
  0x86   :  { %v263_v60 = vrot.slane %v1523_v54, 6  ;;  %v264_v61 = vrot.slane %v1524_v55, 6  ;;  %v70_v7 = vmul.f32 %v56_v58, %v45_v0  ;;  %v1446_v54 = vld [vmem:[%s2062_s0 + $0x7] ss:$8 sm:$0xf] }
  0x87   :  { %v428_v0 = vrot.slane %v1446_v54, %v1709_v12 }
  0x88   :  { %267 = vst [vmem:[#allocation2 + $0x10] sm:$0xcc] %v263_v60  ;;  %268 = vst [vmem:[#allocation2 + $0x18] sm:$0xcc] %v264_v61  ;;  %v39_v1 = vpop.permute.xlu1 %38  ;;  %v37_v2 = vpop.permute.xlu0 %36  ;;  %v436_v60 = vrot.slane %v1446_v54, %v1713_v14 }
  0x89   :  { %v46_v3 = vsel %vm42_vm2, %v39_v1, %v33_v57  ;;  %v43_v4 = vsel %vm42_vm2, %v37_v2, %v39_v1  ;;  %v44_v5 = vsel %vm42_vm2, %v35_v56, %v37_v2  ;;  %v432_v1 = vrot.slane %v1446_v54, %v1711_v13 }
  0x8a   :  { %v69_v8 = vmul.f32 %v52_v59, %v46_v3  ;;  %v71_v9 = vmul.f32 %v60_v62, %v44_v5  ;;  %v72_v15 = vmul.f32 %v64_v63, %v43_v4  ;;  %v424_v59 = vrot.slane %v1446_v54, %v1707_v11 }
  0x8c   :  { %v1517_v17 = vpack.c.bf16 %v70_v7, %v69_v8  ;;  %v1518_v18 = vpack.c.bf16 %v72_v15, %v71_v9  ;;  %v154_v19 = vpop.permute.xlu1 %153  ;;  %v152_v20 = vpop.permute.xlu0 %151 }
  0x8d   :  { %v162_v25 = vsel %vm159_vm3, %v152_v20, %v154_v19 }
  0x8e   :  { %89 = vst [vmem:[#allocation2] sm:$0x33] %v1517_v17  ;;  %90 = vst [vmem:[#allocation2 + $0x8] sm:$0x33] %v1518_v18  ;;  %v188_v31 = vmul.f32 %v174_v21, %v162_v25 }
  0x8f   :  { %v1443_v21 = vld [vmem:[%s2062_s0 + $0x6] ss:$8 sm:$0xf] }
  0x90   :  { %v158_v26 = vpop.permute.xlu1 %157  ;;  %v156_v27 = vpop.permute.xlu0 %155 }
  0x91   :  { %v163_v28 = vsel %vm159_vm3, %v158_v26, %v152_v20  ;;  %v160_v29 = vsel %vm159_vm3, %v156_v27, %v158_v26  ;;  %v161_v30 = vsel %vm159_vm3, %v154_v19, %v156_v27  ;;  %v366_v26 = vrot.slane %v1443_v21, %v1707_v11 }
  0x92   :  { %v187_v32 = vmul.f32 %v170_v22, %v163_v28  ;;  %v189_v33 = vmul.f32 %v178_v23, %v161_v30  ;;  %v190_v34 = vmul.f32 %v182_v24, %v160_v29  ;;  %v378_v27 = vrot.slane %v1443_v21, %v1713_v14 }
  0x93   :  { %v370_v30 = vrot.slane %v1443_v21, %v1709_v12 }
  0x94   :  { %v1521_v36 = vpack.c.bf16 %v188_v31, %v187_v32  ;;  %v1522_v37 = vpack.c.bf16 %v190_v34, %v189_v33  ;;  %v290_v38 = vpop.permute.xlu1 %289  ;;  %v288_v39 = vpop.permute.xlu0 %287  ;;  %v374_v31 = vrot.slane %v1443_v21, %v1711_v13 }
  0x95   :  { %v298_v44 = vsel %vm295_vm4, %v288_v39, %v290_v38 }
  0x96   :  { %207 = vst [vmem:[#allocation2 + $0x10] sm:$0x33] %v1521_v36  ;;  %208 = vst [vmem:[#allocation2 + $0x18] sm:$0x33] %v1522_v37  ;;  %v323_v50 = vmul.f32 %v306_v40, %v298_v44 }
  0x98   :  { %v294_v45 = vpop.permute.xlu1 %293  ;;  %v292_v46 = vpop.permute.xlu0 %291 }
  0x99   :  { %v299_v47 = vsel %vm295_vm4, %v294_v45, %v288_v39  ;;  %v296_v48 = vsel %vm295_vm4, %v292_v46, %v294_v45  ;;  %v297_v49 = vsel %vm295_vm4, %v290_v38, %v292_v46 }
  0x9a   :  { %v326_v51 = vmul.f32 %v318_v41, %v299_v47  ;;  %v324_v52 = vmul.f32 %v310_v42, %v297_v49  ;;  %v325_v53 = vmul.f32 %v314_v43, %v296_v48  ;;  %v1449_v42 = vld [vmem:[%s2062_s0 + $0x20] ss:$8 sm:$0xf] }
  0x9b   :  { %v484_v47 = vrot.slane %v1449_v42, %v1707_v11  ;;  %v496_v48 = vrot.slane %v1449_v42, %v1713_v14  ;;  %v488_v49 = vrot.slane %v1449_v42, %v1709_v12 }
  0x9c   :  { %v1527_v55 = vpack.c.bf16 %v324_v52, %v323_v50  ;;  %v1528_v56 = vpack.c.bf16 %v326_v51, %v325_v53  ;;  %v408_v57 = vpop.permute.xlu1 %407  ;;  %v406_v58 = vpop.permute.xlu0 %405  ;;  %v492_v50 = vrot.slane %v1449_v42, %v1711_v13 }
  0x9d   :  { %v1585_v61 = vld [vmem:[#allocation2 + $0x4] ss:$16 sps:$4 sm:$0xff]   ;;  %v1587_v2 = vld [vmem:[#allocation2 + $0xc] ss:$16 sps:$4 sm:$0xff]   ;;  %v1589_v3 = vld [vmem:[#allocation2] ss:$16 sps:$4 sm:$0xff]   ;;  %v416_v4 = vsel %vm413_vm5, %v406_v58, %v408_v57 }
  0x9e   :  { %v341_v62 = vrot.slane %v1527_v55, 6  ;;  %v342_v63 = vrot.slane %v1528_v56, 6  ;;  %607 = vmatprep.subr.bf16.mxu0 %v1585_v61  ;;  %v1590_v5 = vld [vmem:[#allocation2 + $0x8] ss:$16 sps:$4 sm:$0xff]   ;;  %648 = vmatprep.subr.bf16.mxu1 %v1587_v2  ;;  %v441_v17 = vmul.f32 %v424_v59, %v416_v4 }
  0x9f   :  { %608 = vmatpush1.bf16.msra.mxu0 %v1589_v3  ;;  %649 = vmatpush1.bf16.msra.mxu1 %v1590_v5 }
  0xa0   :  { %345 = vst [vmem:[#allocation2 + $0x20] sm:$0xcc] %v341_v62  ;;  %346 = vst [vmem:[#allocation2 + $0x28] sm:$0xcc] %v342_v63  ;;  %v412_v7 = vpop.permute.xlu1 %411  ;;  %v410_v8 = vpop.permute.xlu0 %409 }
  0xa1   :  { %v417_v9 = vsel %vm413_vm5, %v412_v7, %v406_v58  ;;  %v414_v15 = vsel %vm413_vm5, %v410_v8, %v412_v7  ;;  %v415_v16 = vsel %vm413_vm5, %v408_v57, %v410_v8 }
  0xa2   :  { %v444_v18 = vmul.f32 %v436_v60, %v417_v9  ;;  %v442_v19 = vmul.f32 %v428_v0, %v415_v16  ;;  %v443_v20 = vmul.f32 %v432_v1, %v414_v15 }
  0xa4   :  { %v1531_v22 = vpack.c.bf16 %v442_v19, %v441_v17  ;;  %v1532_v23 = vpack.c.bf16 %v444_v18, %v443_v20  ;;  %v350_v24 = vpop.permute.xlu1 %349  ;;  %v348_v25 = vpop.permute.xlu0 %347  ;;  %v523_v17 = vld [vmem:[%s2063_s2] sm:$0xf] }
  0xa5   :  { %v358_v32 = vsel %vm355_vm6, %v348_v25, %v350_v24 }
  0xa6   :  { %v459_v28 = vrot.slane %v1531_v22, 6  ;;  %v460_v29 = vrot.slane %v1532_v23, 6  ;;  %v383_v38 = vmul.f32 %v366_v26, %v358_v32 }
  0xa8   :  { %463 = vst [vmem:[#allocation2 + $0x30] sm:$0xcc] %v459_v28  ;;  %464 = vst [vmem:[#allocation2 + $0x38] sm:$0xcc] %v460_v29  ;;  %v354_v33 = vpop.permute.xlu1 %353  ;;  %v352_v34 = vpop.permute.xlu0 %351 }
  0xa9   :  { %v359_v35 = vsel %vm355_vm6, %v354_v33, %v348_v25  ;;  %v356_v36 = vsel %vm355_vm6, %v352_v34, %v354_v33  ;;  %v357_v37 = vsel %vm355_vm6, %v350_v24, %v352_v34 }
  0xaa   :  { %v386_v39 = vmul.f32 %v378_v27, %v359_v35  ;;  %v384_v40 = vmul.f32 %v370_v30, %v357_v37  ;;  %v385_v41 = vmul.f32 %v374_v31, %v356_v36 }
  0xac   :  { %v1529_v43 = vpack.c.bf16 %v384_v40, %v383_v38  ;;  %v1530_v44 = vpack.c.bf16 %v386_v39, %v385_v41  ;;  %v468_v45 = vpop.permute.xlu1 %467  ;;  %v466_v46 = vpop.permute.xlu0 %465  ;;  %v1186_v38 = vld [vmem:[%s2064_s5] sm:$0xf] }
  0xad   :  { %v476_v51 = vsel %vm473_vm7, %v466_v46, %v468_v45 }
  0xae   :  { %403 = vst [vmem:[#allocation2 + $0x30] sm:$0x33] %v1529_v43  ;;  %404 = vst [vmem:[#allocation2 + $0x38] sm:$0x33] %v1530_v44  ;;  %v501_v57 = vmul.f32 %v484_v47, %v476_v51 }
  0xaf   :  { %v713_v43 = vld [vmem:[%s2062_s0] ss:$8 sm:$0xf]  ;;  %v1470_v44 = vld [vmem:[%s2062_s0 + $0x1] ss:$8 sm:$0xf] }
  0xb0   :  { %v472_v52 = vpop.permute.xlu1 %471  ;;  %v470_v53 = vpop.permute.xlu0 %469  ;;  %v722_v47 = vrot.slane %v713_v43, %v1709_v12 }
  0xb1   :  { %v477_v54 = vsel %vm473_vm7, %v472_v52, %v466_v46  ;;  %v474_v55 = vsel %vm473_vm7, %v470_v53, %v472_v52  ;;  %v475_v56 = vsel %vm473_vm7, %v468_v45, %v470_v53  ;;  %v730_v53 = vrot.slane %v713_v43, %v1713_v14 }
  0xb2   :  { %v504_v58 = vmul.f32 %v496_v48, %v477_v54  ;;  %v502_v59 = vmul.f32 %v488_v49, %v475_v56  ;;  %v503_v60 = vmul.f32 %v492_v50, %v474_v55  ;;  %v778_v48 = vrot.slane %v1470_v44, %v1709_v12 }
  0xb3   :  { %v718_v50 = vrot.slane %v713_v43, %v1707_v11  ;;  %v782_v54 = vrot.slane %v1470_v44, %v1711_v13  ;;  %v774_v56 = vrot.slane %v1470_v44, %v1707_v11 }
  0xb4   :  { %v1533_v61 = vpack.c.bf16 %v502_v59, %v501_v57  ;;  %v1534_v62 = vpack.c.bf16 %v504_v58, %v503_v60  ;;  %v786_v60 = vrot.slane %v1470_v44, %v1713_v14 }
  0xb5   :  { %v1591_v63 = vld [vmem:[#allocation2 + $0x24] ss:$16 sps:$4 sm:$0xff]   ;;  %v1593_v0 = vld [vmem:[#allocation2 + $0x2c] ss:$16 sps:$4 sm:$0xff]   ;;  %v1595_v1 = vld [vmem:[#allocation2 + $0x20] ss:$16 sps:$4 sm:$0xff]  }
  0xb6   :  { %521 = vst [vmem:[#allocation2 + $0x40] sm:$0x33] %v1533_v61  ;;  %522 = vst [vmem:[#allocation2 + $0x48] sm:$0x33] %v1534_v62  ;;  %v1596_v2 = vld [vmem:[#allocation2 + $0x28] ss:$16 sps:$4 sm:$0xff]   ;;  %609 = vmatprep.subr.bf16.mxu0 %v1591_v63  ;;  %650 = vmatprep.subr.bf16.mxu1 %v1593_v0  ;;  %v726_v61 = vrot.slane %v713_v43, %v1711_v13 }
  0xb7   :  { %610 = vmatpush1.bf16.msra.mxu0 %v1595_v1  ;;  %651 = vmatpush1.bf16.msra.mxu1 %v1596_v2 }
  0xbd   :  { %v532_v3 = vld [vmem:[#allocation2 + $0x40] sm:$0x33]  ;;  %v533_v4 = vld [vmem:[#allocation2 + $0x48] sm:$0x33] }
  0xbe   :  { %v1461_v5 = vcombine.high %v532_v3, %v532_v3  ;;  %v1463_v7 = vcombine.high %v533_v4, %v533_v4  ;;  %v1460_v8 = vcombine.low %v532_v3, %v532_v3  ;;  %v1462_v9 = vcombine.low %v533_v4, %v533_v4 }
  0xc0   :  { %1464 = vmatprep.subr.msk.bf16.mxu0 %vm594_vm8, %v1461_v5  ;;  %1466 = vmatprep.subr.msk.bf16.mxu1 %vm594_vm8, %v1463_v7  ;;  %v596_v15 = vsel %vm594_vm8, %v1460_v8, 0  ;;  %v602_v16 = vsel %vm594_vm8, %v1462_v9, 0 }
  0xc1   :  { %612 = vmatpush1.bf16.msra.mxu0 %v596_v15  ;;  %653 = vmatpush1.bf16.msra.mxu1 %v602_v16  ;;  %v538_v18 = vpop.permute.xlu0 %537 }
  0xc4   :  { %1465 = vmatmul.mubr.msk.bf16.vlgmr.msra.gmra.mrb[0].mxu0 %vm590_vm9, %v523_v17  ;;  %1467 = vmatmul.mubr.msk.bf16.vlgmr.msra.gmra.mrb[0].mxu1 %vm590_vm9, %v523_v17 }
  0xc5   :  { %1331 = vmatprep.mubr.bf16.mxu0 %v1625_v6  ;;  %1372 = vmatprep.mubr.bf16.mxu1 %v1625_v6 }
 0x197   :  { %v641_v19 = vpop.f32.mrb[0].mxu0  ;;  %v682_v20 = vpop.f32.mrb[0].mxu1 }
 0x198   :  { %v642_v21 = vadd.f32 %v641_v19, %v538_v18  ;;  %v683_v22 = vadd.f32 %v682_v20, %v538_v18  ;;  %v643_v23 = vpop.f32.mrb[1].mxu0  ;;  %v684_v24 = vpop.f32.mrb[1].mxu1 }
 0x199   :  { %v644_v25 = vadd.f32 %v643_v23, %v538_v18  ;;  %v645_v26 = vpop.f32.mrb[2].mxu0  ;;  %v686_v27 = vpop.f32.mrb[2].mxu1  ;;  %v685_v6 = vadd.f32 %v684_v24, %v538_v18  ;;  %v1473_v23 = vld [vmem:[%s2062_s0 + $0x2] ss:$8 sm:$0xf] }
 0x19a   :  { %vm689_vm10 = vcmp.gt.f32.partialorder %v642_v21, 0.0  ;;  %v693_v28 = vmul.f32 0.1, %v642_v21  ;;  %vm691_vm11 = vcmp.gt.f32.partialorder %v683_v22, 0.0  ;;  %v695_v29 = vmul.f32 0.1, %v683_v22 }
 0x19b   :  { %v694_v32 = vmul.f32 0.1, %v644_v25  ;;  %v646_v33 = vpop.f32.mrb[3].mxu0  ;;  %v687_v34 = vpop.f32.mrb[3].mxu1  ;;  %vm690_vm12 = vcmp.gt.f32.partialorder %v644_v25, 0.0  ;;  %vm692_vm13 = vcmp.gt.f32.partialorder %v685_v6, 0.0  ;;  %v834_v27 = vrot.slane %v1473_v23, %v1709_v12 }
 0x19c   :  { %v1848_v30 = vsel %vm689_vm10, %v642_v21, %v693_v28  ;;  %v1850_v31 = vsel %vm691_vm11, %v683_v22, %v695_v29  ;;  %v696_v36 = vmul.f32 0.1, %v685_v6  ;;  %v1476_v24 = vld [vmem:[%s2062_s0 + $0x3] ss:$8 sm:$0xf]  ;;  %v842_v34 = vrot.slane %v1473_v23, %v1713_v14 }
 0x19d   :  { %705 = vrot.lane.b32.xlu0 %v1850_v31, %s1619_s1  ;;  %701 = vrot.lane.b32.xlu1 %v1848_v30, %s1619_s1  ;;  %v1856_v35 = vsel %vm690_vm12, %v644_v25, %v694_v32  ;;  %v890_v28 = vrot.slane %v1476_v24, %v1709_v12  ;;  %v830_v32 = vrot.slane %v1473_v23, %v1707_v11 }
 0x19e   :  { %v1862_v37 = vsel %vm692_vm13, %v685_v6, %v696_v36  ;;  %v894_v36 = vrot.slane %v1476_v24, %v1711_v13  ;;  %v898_v44 = vrot.slane %v1476_v24, %v1713_v14 }
 0x1a1   :  { %757 = vrot.lane.b32.xlu0 %v1848_v30, %s1617_s25  ;;  %703 = vrot.lane.b32.xlu1 %v1856_v35, %s1619_s1 }
 0x1a5   :  { %761 = vrot.lane.b32.xlu0 %v1850_v31, %s1617_s25  ;;  %707 = vrot.lane.b32.xlu1 %v1862_v37, %s1619_s1 }
 0x1a9   :  { %813 = vrot.lane.b32.xlu0 %v1848_v30, %s1620_s27  ;;  %759 = vrot.lane.b32.xlu1 %v1856_v35, %s1617_s25 }
 0x1ad   :  { %817 = vrot.lane.b32.xlu0 %v1850_v31, %s1620_s27  ;;  %763 = vrot.lane.b32.xlu1 %v1862_v37, %s1617_s25 }
 0x1b1   :  { %869 = vrot.lane.b32.xlu0 %v1848_v30, %s1618_s26  ;;  %815 = vrot.lane.b32.xlu1 %v1856_v35, %s1620_s27 }
 0x1b5   :  { %873 = vrot.lane.b32.xlu0 %v1850_v31, %s1618_s26  ;;  %819 = vrot.lane.b32.xlu1 %v1862_v37, %s1620_s27 }
 0x1b9   :  { %943 = vrot.lane.b32.xlu0 %v1848_v30, %s1621_s28  ;;  %871 = vrot.lane.b32.xlu1 %v1856_v35, %s1618_s26 }
 0x1bd   :  { %947 = vrot.lane.b32.xlu0 %v1850_v31, %s1621_s28  ;;  %875 = vrot.lane.b32.xlu1 %v1862_v37, %s1618_s26 }
 0x1c1   :  { %999 = vrot.lane.b32.xlu0 %v1848_v30, %s1623_s30  ;;  %945 = vrot.lane.b32.xlu1 %v1856_v35, %s1621_s28 }
 0x1c5   :  { %1003 = vrot.lane.b32.xlu0 %v1850_v31, %s1623_s30  ;;  %949 = vrot.lane.b32.xlu1 %v1862_v37, %s1621_s28 }
 0x1c9   :  { %1055 = vrot.lane.b32.xlu0 %v1848_v30, %s1622_s29  ;;  %1001 = vrot.lane.b32.xlu1 %v1856_v35, %s1623_s30 }
 0x1cd   :  { %1059 = vrot.lane.b32.xlu0 %v1850_v31, %s1622_s29  ;;  %1005 = vrot.lane.b32.xlu1 %v1862_v37, %s1623_s30 }
 0x1d1   :  { %1111 = vrot.lane.b32.xlu0 %v1848_v30, %s1624_s7  ;;  %1057 = vrot.lane.b32.xlu1 %v1856_v35, %s1622_s29 }
 0x1d5   :  { %1115 = vrot.lane.b32.xlu0 %v1850_v31, %s1624_s7  ;;  %1061 = vrot.lane.b32.xlu1 %v1862_v37, %s1622_s29 }
 0x1d9   :  { %1189 = vperm.xlu0 %1582, %v1186_v38   ;;  %1113 = vrot.lane.b32.xlu1 %v1856_v35, %s1624_s7 }
 0x1dd   :  { %1117 = vrot.lane.b32.xlu1 %v1862_v37, %s1624_s7 }
 0x20f   :  { %v706_v39 = vpop.permute.xlu0 %705  ;;  %v702_v40 = vpop.permute.xlu1 %701 }
 0x213   :  { %v758_v41 = vpop.permute.xlu0 %757  ;;  %v704_v42 = vpop.permute.xlu1 %703 }
 0x214   :  { %v711_v49 = vsel %vm42_vm2, %v702_v40, %v704_v42  ;;  %v710_v0 = vsel %vm42_vm2, %v704_v42, %v706_v39 }
 0x215   :  { %v736_v57 = vmul.f32 %v722_v47, %v711_v49  ;;  %v737_v17 = vmul.f32 %v726_v61, %v710_v0 }
 0x217   :  { %v762_v45 = vpop.permute.xlu0 %761  ;;  %v708_v46 = vpop.permute.xlu1 %707 }
 0x218   :  { %v709_v62 = vsel %vm42_vm2, %v706_v39, %v708_v46  ;;  %v712_v63 = vsel %vm42_vm2, %v708_v46, %v702_v40  ;;  %v886_v39 = vrot.slane %v1476_v24, %v1707_v11  ;;  %v1481_v40 = vld [vmem:[%s2062_s0 + $0x5] ss:$8 sm:$0xf] }
 0x219   :  { %v735_v8 = vmul.f32 %v718_v50, %v712_v63  ;;  %v738_v9 = vmul.f32 %v730_v53, %v709_v62  ;;  %v960_v53 = vrot.slane %v1481_v40, %v1707_v11 }
 0x21b   :  { %v814_v51 = vpop.permute.xlu0 %813  ;;  %v760_v52 = vpop.permute.xlu1 %759 }
 0x21c   :  { %v767_v55 = vsel %vm99_vm0, %v758_v41, %v760_v52  ;;  %v766_v58 = vsel %vm99_vm0, %v760_v52, %v762_v45 }
 0x21d   :  { %v792_v59 = vmul.f32 %v778_v48, %v767_v55  ;;  %v793_v4 = vmul.f32 %v782_v54, %v766_v58 }
 0x21f   :  { %v818_v1 = vpop.permute.xlu0 %817  ;;  %v764_v2 = vpop.permute.xlu1 %763  ;;  %v1554_v3 = vpack.c.bf16 %v792_v59, %v736_v57  ;;  %v1555_v22 = vpack.c.bf16 %v793_v4, %v737_v17  ;;  %v964_v57 = vrot.slane %v1481_v40, %v1709_v12 }
 0x220   :  { %v765_v5 = vsel %vm99_vm0, %v762_v45, %v764_v2  ;;  %v768_v7 = vsel %vm99_vm0, %v764_v2, %v758_v41  ;;  %v838_v45 = vrot.slane %v1473_v23, %v1711_v13 }
 0x221   :  { %v791_v15 = vmul.f32 %v774_v56, %v768_v7  ;;  %v794_v16 = vmul.f32 %v786_v60, %v765_v5  ;;  %1299 = vmatprep.subr.bf16.mxu0 %v1554_v3  ;;  %v968_v5 = vrot.slane %v1481_v40, %v1711_v13 }
 0x223   :  { %v1553_v18 = vpack.c.bf16 %v791_v15, %v735_v8  ;;  %v870_v19 = vpop.permute.xlu0 %869  ;;  %v816_v20 = vpop.permute.xlu1 %815  ;;  %v1556_v21 = vpack.c.bf16 %v794_v16, %v738_v9  ;;  %v972_v9 = vrot.slane %v1481_v40, %v1713_v14 }
 0x224   :  { %v823_v29 = vsel %vm159_vm3, %v814_v51, %v816_v20  ;;  %v822_v48 = vsel %vm159_vm3, %v816_v20, %v818_v1 }
 0x225   :  { %1300 = vmatpush1.bf16.msra.mxu0 %v1553_v18  ;;  %1340 = vmatprep.subr.bf16.mxu1 %v1556_v21  ;;  %v848_v41 = vmul.f32 %v834_v27, %v823_v29  ;;  %v849_v61 = vmul.f32 %v838_v45, %v822_v48  ;;  %v1490_v48 = vld [vmem:[%s2062_s0 + $0x20] ss:$8 sm:$0xf] }
 0x226   :  { %1341 = vmatpush1.bf16.msra.mxu1 %v1555_v22 }
 0x227   :  { %v874_v25 = vpop.permute.xlu0 %873  ;;  %v820_v26 = vpop.permute.xlu1 %819 }
 0x228   :  { %v821_v46 = vsel %vm159_vm3, %v818_v1, %v820_v26  ;;  %v824_v47 = vsel %vm159_vm3, %v820_v26, %v814_v51  ;;  %v1487_v26 = vld [vmem:[%s2062_s0 + $0x7] ss:$8 sm:$0xf] }
 0x229   :  { %v847_v58 = vmul.f32 %v830_v32, %v824_v47  ;;  %v850_v59 = vmul.f32 %v842_v34, %v821_v46  ;;  %v1072_v32 = vrot.slane %v1487_v26, %v1707_v11 }
 0x22b   :  { %v944_v6 = vpop.permute.xlu0 %943  ;;  %v872_v33 = vpop.permute.xlu1 %871 }
 0x22c   :  { %v879_v38 = vsel %vm217_vm1, %v870_v19, %v872_v33  ;;  %v878_v42 = vsel %vm217_vm1, %v872_v33, %v874_v25 }
 0x22d   :  { %v904_v43 = vmul.f32 %v890_v28, %v879_v38  ;;  %v905_v54 = vmul.f32 %v894_v36, %v878_v42  ;;  %v1084_v42 = vrot.slane %v1487_v26, %v1713_v14 }
 0x22f   :  { %v948_v49 = vpop.permute.xlu0 %947  ;;  %v876_v50 = vpop.permute.xlu1 %875  ;;  %v1558_v52 = vpack.c.bf16 %v904_v43, %v848_v41  ;;  %v1559_v2 = vpack.c.bf16 %v905_v54, %v849_v61  ;;  %v1080_v41 = vrot.slane %v1487_v26, %v1711_v13 }
 0x230   :  { %v877_v55 = vsel %vm217_vm1, %v874_v25, %v876_v50  ;;  %v880_v56 = vsel %vm217_vm1, %v876_v50, %v870_v19 }
 0x231   :  { %v903_v51 = vmul.f32 %v886_v39, %v880_v56  ;;  %v906_v60 = vmul.f32 %v898_v44, %v877_v55  ;;  %1301 = vmatprep.subr.bf16.mxu0 %v1558_v52 }
 0x233   :  { %v1557_v62 = vpack.c.bf16 %v903_v51, %v847_v58  ;;  %v1000_v63 = vpop.permute.xlu0 %999  ;;  %v946_v0 = vpop.permute.xlu1 %945  ;;  %v1560_v1 = vpack.c.bf16 %v906_v60, %v850_v59  ;;  %v1132_v58 = vrot.slane %v1490_v48, %v1709_v12 }
 0x234   :  { %v952_v3 = vsel %vm295_vm4, %v946_v0, %v948_v49  ;;  %v953_v4 = vsel %vm295_vm4, %v944_v6, %v946_v0 }
 0x235   :  { %v977_v7 = vmul.f32 %v960_v53, %v953_v4  ;;  %v978_v8 = vmul.f32 %v964_v57, %v952_v3  ;;  %1302 = vmatpush1.bf16.msra.mxu0 %v1557_v62  ;;  %1342 = vmatprep.subr.bf16.mxu1 %v1560_v1  ;;  %v1128_v57 = vrot.slane %v1490_v48, %v1707_v11 }
 0x236   :  { %1343 = vmatpush1.bf16.msra.mxu1 %v1559_v2 }
 0x237   :  { %v1561_v15 = vpack.c.bf16 %v977_v7, %v1848_v30  ;;  %v1004_v16 = vpop.permute.xlu0 %1003  ;;  %v950_v17 = vpop.permute.xlu1 %949  ;;  %v1562_v18 = vpack.c.bf16 %v978_v8, %v1856_v35  ;;  %v1484_v35 = vld [vmem:[%s2062_s0 + $0x6] ss:$8 sm:$0xf] }
 0x238   :  { %v951_v19 = vsel %vm295_vm4, %v948_v49, %v950_v17  ;;  %v954_v20 = vsel %vm295_vm4, %v950_v17, %v944_v6  ;;  %v1016_v29 = vrot.slane %v1484_v35, %v1707_v11  ;;  %v1024_v34 = vrot.slane %v1484_v35, %v1711_v13 }
 0x239   :  { %v979_v21 = vmul.f32 %v968_v5, %v951_v19  ;;  %v980_v22 = vmul.f32 %v972_v9, %v954_v20  ;;  %1303 = vmatprep.subr.bf16.mxu0 %v1562_v18  ;;  %v1028_v36 = vrot.slane %v1484_v35, %v1713_v14  ;;  %v1140_v5 = vrot.slane %v1490_v48, %v1713_v14 }
 0x23a   :  { %1304 = vmatpush1.bf16.msra.mxu0 %v1561_v15 }
 0x23b   :  { %v1563_v23 = vpack.c.bf16 %v979_v21, %v1850_v31  ;;  %v1056_v24 = vpop.permute.xlu0 %1055  ;;  %v1002_v25 = vpop.permute.xlu1 %1001  ;;  %v1564_v30 = vpack.c.bf16 %v980_v22, %v1862_v37  ;;  %v1020_v31 = vrot.slane %v1484_v35, %v1709_v12  ;;  %v1076_v37 = vrot.slane %v1487_v26, %v1709_v12 }
 0x23c   :  { %v1008_v6 = vsel %vm355_vm6, %v1002_v25, %v1004_v16  ;;  %v1009_v33 = vsel %vm355_vm6, %v1000_v63, %v1002_v25  ;;  %v1136_v12 = vrot.slane %v1490_v48, %v1711_v13  ;;  %v1167_v13 = vld [vmem:[%s2065_s4] sm:$0x3] }
 0x23d   :  { %1344 = vmatprep.subr.bf16.mxu1 %v1564_v30  ;;  %v1033_v43 = vmul.f32 %v1016_v29, %v1009_v33  ;;  %v1034_v44 = vmul.f32 %v1020_v31, %v1008_v6 }
 0x23e   :  { %1345 = vmatpush1.bf16.msra.mxu1 %v1563_v23 }
 0x23f   :  { %v1060_v27 = vpop.permute.xlu0 %1059  ;;  %v1006_v28 = vpop.permute.xlu1 %1005 }
 0x240   :  { %v1007_v49 = vsel %vm355_vm6, %v1004_v16, %v1006_v28  ;;  %v1010_v50 = vsel %vm355_vm6, %v1006_v28, %v1000_v63 }
 0x241   :  { %v1035_v59 = vmul.f32 %v1024_v34, %v1007_v49  ;;  %v1036_v51 = vmul.f32 %v1028_v36, %v1010_v50 }
 0x243   :  { %v1058_v38 = vpop.permute.xlu1 %1057  ;;  %v1112_v45 = vpop.permute.xlu0 %1111 }
 0x244   :  { %v1064_v39 = vsel %vm413_vm5, %v1058_v38, %v1060_v27  ;;  %v1065_v40 = vsel %vm413_vm5, %v1056_v24, %v1058_v38 }
 0x245   :  { %v1089_v46 = vmul.f32 %v1072_v32, %v1065_v40  ;;  %v1090_v47 = vmul.f32 %v1076_v37, %v1064_v39 }
 0x247   :  { %v1565_v52 = vpack.c.bf16 %v1089_v46, %v1033_v43  ;;  %v1062_v53 = vpop.permute.xlu1 %1061  ;;  %v1566_v54 = vpack.c.bf16 %v1090_v47, %v1034_v44  ;;  %v1116_v62 = vpop.permute.xlu0 %1115 }
 0x248   :  { %v1063_v55 = vsel %vm413_vm5, %v1060_v27, %v1062_v53  ;;  %v1066_v56 = vsel %vm413_vm5, %v1062_v53, %v1056_v24 }
 0x249   :  { %v1091_v60 = vmul.f32 %v1080_v41, %v1063_v55  ;;  %v1092_v61 = vmul.f32 %v1084_v42, %v1066_v56  ;;  %1305 = vmatprep.subr.bf16.mxu0 %v1566_v54 }
 0x24a   :  { %1306 = vmatpush1.bf16.msra.mxu0 %v1565_v52 }
 0x24b   :  { %v1567_v63 = vpack.c.bf16 %v1091_v60, %v1035_v59  ;;  %v1114_v0 = vpop.permute.xlu1 %1113  ;;  %v1568_v1 = vpack.c.bf16 %v1092_v61, %v1036_v51 }
 0x24c   :  { %v1120_v2 = vsel %vm473_vm7, %v1114_v0, %v1116_v62  ;;  %v1121_v3 = vsel %vm473_vm7, %v1112_v45, %v1114_v0 }
 0x24d   :  { %v1145_v4 = vmul.f32 %v1128_v57, %v1121_v3  ;;  %v1146_v11 = vmul.f32 %v1132_v58, %v1120_v2  ;;  %1346 = vmatprep.subr.bf16.mxu1 %v1568_v1 }
 0x24e   :  { %1347 = vmatpush1.bf16.msra.mxu1 %v1567_v63 }
 0x24f   :  { %v1569_v7 = vpack.c.bf16 %v1145_v4, %v1145_v4  ;;  %v1570_v8 = vpack.c.bf16 %v1146_v11, %v1146_v11  ;;  %v1118_v9 = vpop.permute.xlu1 %1117 }
 0x250   :  { %v1119_v15 = vsel %vm473_vm7, %v1116_v62, %v1118_v9  ;;  %v1122_v16 = vsel %vm473_vm7, %v1118_v9, %v1112_v45 }
 0x251   :  { %v1147_v17 = vmul.f32 %v1136_v12, %v1119_v15  ;;  %v1148_v18 = vmul.f32 %v1140_v5, %v1122_v16  ;;  %1513 = vmatprep.subr.msk.bf16.mxu0 %vm1286_vm14, %v1570_v8  ;;  %v1288_v19 = vsel %vm1286_vm14, %v1569_v7, 0 }
 0x252   :  { %1308 = vmatpush1.bf16.msra.mxu0 %v1288_v19 }
 0x253   :  { %v1571_v14 = vpack.c.bf16 %v1147_v17, %v1147_v17  ;;  %v1572_v20 = vpack.c.bf16 %v1148_v18, %v1148_v18 }
 0x255   :  { %1514 = vmatmul.mubr.msk.bf16.vlgmr.msra.gmra.mrb[4].mxu0 %vm1282_vm15, %v1167_v13  ;;  %1515 = vmatprep.subr.msk.bf16.mxu1 %vm1286_vm14, %v1572_v20  ;;  %v1294_v10 = vsel %vm1286_vm14, %v1571_v14, 0 }
 0x256   :  { %1349 = vmatpush1.bf16.msra.mxu1 %v1294_v10 }
 0x258   :  { %v1190_v21 = vpop.permute.xlu0 %1189 }
 0x259   :  { %1516 = vmatmul.mubr.msk.bf16.vlgmr.msra.gmra.mrb[4].mxu1 %vm1282_vm15, %v1167_v13 }
 0x328   :  { %v1333_v22 = vpop.f32.mrb[4].mxu0 }
 0x329   :  { %v1334_v23 = vadd.f32 %v1333_v22, %v1190_v21  ;;  %v1335_v24 = vpop.f32.mrb[5].mxu0 }
 0x32a   :  { %v1336_v25 = vadd.f32 %v1335_v24, %v1190_v21  ;;  %v1337_v30 = vpop.f32.mrb[6].mxu0 }
 0x32b   :  { %vm1381_vm0 = vcmp.gt.f32.partialorder %v1334_v23, 0.0  ;;  %v1385_v35 = vmul.f32 0.1, %v1334_v23  ;;  %v1338_v26 = vpop.f32.mrb[7].mxu0 }
 0x32c   :  { %vm1382_vm1 = vcmp.gt.f32.partialorder %v1336_v25, 0.0  ;;  %v1386_v27 = vmul.f32 0.1, %v1336_v25  ;;  %v1374_v28 = vpop.f32.mrb[4].mxu1 }
 0x32d   :  { %v1389_v29 = vsel %vm1381_vm0, %v1334_v23, %v1385_v35  ;;  %v1375_v31 = vadd.f32 %v1374_v28, %v1190_v21  ;;  %v1376_v32 = vpop.f32.mrb[5].mxu1 }
 0x32e   :  { %v1393_v37 = vsub.f32 0.0, %v1389_v29  ;;  %v1390_v6 = vsel %vm1382_vm1, %v1336_v25, %v1386_v27  ;;  %v1377_v33 = vadd.f32 %v1376_v32, %v1190_v21  ;;  %v1378_v34 = vpop.f32.mrb[6].mxu1 }
 0x32f   :  { %v1394_v36 = vsub.f32 0.0, %v1390_v6  ;;  %vm1383_vm2 = vcmp.gt.f32.partialorder %v1375_v31, 0.0  ;;  %v1387_v38 = vmul.f32 0.1, %v1375_v31  ;;  %v1379_v39 = vpop.f32.mrb[7].mxu1 }
 0x330   :  { %v1397_v40 = vmul.f32 1.442695, %v1393_v37  ;;  %vm1384_vm3 = vcmp.gt.f32.partialorder %v1377_v33, 0.0  ;;  %v1388_v41 = vmul.f32 0.1, %v1377_v33 }
 0x331   :  { %v1399_v42 = vmul.f32 1.442695, %v1394_v36  ;;  %v1391_v43 = vsel %vm1383_vm2, %v1375_v31, %v1387_v38 }
 0x332   :  { %1601 = vpow2.f32 %v1397_v40  ;;  %v1395_v44 = vsub.f32 0.0, %v1391_v43  ;;  %v1392_v45 = vsel %vm1384_vm3, %v1377_v33, %v1388_v41 }
 0x333   :  { %1603 = vpow2.f32 %v1399_v42  ;;  %v1396_v46 = vsub.f32 0.0, %v1392_v45 }
 0x334   :  { %v1401_v47 = vmul.f32 1.442695, %v1395_v44 }
 0x335   :  { %v1403_v48 = vmul.f32 1.442695, %v1396_v46 }
 0x336   :  { %1605 = vpow2.f32 %v1401_v47 }
 0x337   :  { %1607 = vpow2.f32 %v1403_v48 }
 0x33c   :  { %v1602_v49 = vpop.eup %1601 }
 0x33d   :  { %v1604_v50 = vpop.eup %1603  ;;  %v1405_v52 = vadd.f32 1.0, %v1602_v49 }
 0x33e   :  { %v1406_v53 = vadd.f32 1.0, %v1604_v50 }
 0x33f   :  { %1609 = vrcp.f32 %v1405_v52 }
 0x340   :  { %v1606_v54 = vpop.eup %1605  ;;  %1611 = vrcp.f32 %v1406_v53 }
 0x341   :  { %v1608_v55 = vpop.eup %1607  ;;  %v1407_v56 = vadd.f32 1.0, %v1606_v54 }
 0x342   :  { %v1408_v57 = vadd.f32 1.0, %v1608_v55 }
 0x343   :  { %1613 = vrcp.f32 %v1407_v56 }
 0x344   :  { %1615 = vrcp.f32 %v1408_v57 }
 0x349   :  { %v1610_v58 = vpop.eup %1609 }
 0x34a   :  { %v1612_v59 = vpop.eup %1611 }
 0x34b   :  { %v1417_v51 = vcombine.low %v1610_v58, %v1612_v59 }
 0x34d   :  { %v1614_v60 = vpop.eup %1613  ;;  %1421 = vst [vmem:[%s2066_s6] sm:$0xff] %v1417_v51 }
 0x34e   :  { %v1616_v61 = vpop.eup %1615 }
 0x34f   :  { %v1418_v62 = vcombine.low %v1614_v60, %v1616_v61 }
 0x351   :  { %1422 = vst [vmem:[%s2066_s6 + $0x8] sm:$0xff] %v1418_v62 }

</bundles_post_ra>
